<compile_context>
chip_gen: v7x
topology: tpu7x:2x2x1
jax: 0.10.0
libtpu: 0.0.40
codegen_flags: <defaults>
</compile_context>

<pallas_src>
import functools

import jax
import jax.numpy as jnp
from jax.experimental import pallas as pl
from jax.experimental.pallas import tpu as pltpu

EPS = 1e-5          # nn.BatchNorm2d default eps
NEG_SLOPE = 0.01    # nn.LeakyReLU default negative_slope
_MXU_MIN_CH = 32    # below this the 1x1 "conv" stays on the VPU


def _conv1x1(w, v):
    """(C_out, C_in) @ (C_in, T) -> (C_out, T); unrolled VPU MACs for tiny C."""
    c_out, c_in = w.shape
    if c_in >= _MXU_MIN_CH or c_out >= 128:
        return jnp.dot(w, v, preferred_element_type=jnp.float32)
    acc = w[:, 0:1] * v[0:1, :]
    for k in range(1, c_in):
        acc = acc + w[:, k:k + 1] * v[k:k + 1, :]
    return acc


def _dual_conv1x1(w, g, x):
    """[Wg | Wx] @ [g ; x] -> (F_int, T).

    VPU path avoids materializing the channel concat; wide channel counts
    concat once and use the MXU.
    """
    c_out, c_in = w.shape
    c_g = g.shape[0]
    if c_in >= _MXU_MIN_CH or c_out >= 128:
        gx = jnp.concatenate([g, x], axis=0)
        return jnp.dot(w, gx, preferred_element_type=jnp.float32)
    acc = w[:, 0:1] * g[0:1, :]
    for k in range(1, c_g):
        acc = acc + w[:, k:k + 1] * g[k:k + 1, :]
    for k in range(c_g, c_in):
        acc = acc + w[:, k:k + 1] * x[k - c_g:k - c_g + 1, :]
    return acc


def _gate_logit_kernel(g_ref, x_ref, wgx_ref, b_ref, wp_ref,
                       psi_ref, stats_ref, *, tile, valid_pixels):
    """Pass 1: folded [Wg|Wx] conv+BN, LeakyReLU, psi logits + Chan partials."""
    g = g_ref[0].astype(jnp.float32)                 # (F_g, T), pixels on lanes
    x = x_ref[0].astype(jnp.float32)                 # (F_l, T)
    s = _dual_conv1x1(wgx_ref[...], g, x) + b_ref[...]
    s = jnp.where(s >= 0.0, s, NEG_SLOPE * s)        # LeakyReLU
    p = _conv1x1(wp_ref[...], s)                     # (1, T) psi logits (pre-BN3)
    psi_ref[0] = p.astype(psi_ref.dtype)

    # Chan-combinable BN3 partials: (count, sum, centered M2 about tile mean).
    if valid_pixels is not None:                     # padded pixel axis: mask tail
        t = pl.program_id(1)
        lane = jax.lax.broadcasted_iota(jnp.int32, p.shape, 1)
        mask = (t * tile + lane) < valid_pixels
        pm = jnp.where(mask, p, 0.0)
        cnt = jnp.sum(mask.astype(jnp.float32), axis=1, keepdims=True)
    else:
        pm = p
        cnt = jnp.full((1, 1), float(tile), jnp.float32)
    psum = jnp.sum(pm, axis=1, keepdims=True)        # (1, 1)
    mean_t = psum / cnt
    d = pm - mean_t
    if valid_pixels is not None:
        d = jnp.where(mask, d, 0.0)
    m2 = jnp.sum(d * d, axis=1, keepdims=True)       # (1, 1)

    lane128 = jax.lax.broadcasted_iota(jnp.int32, (1, 128), 1)
    stats_ref[0] = (jnp.where(lane128 == 0, cnt, 0.0)
                    + jnp.where(lane128 == 1, psum, 0.0)
                    + jnp.where(lane128 == 2, m2, 0.0))


def _gate_apply_kernel(coef_ref, x_ref, psi_ref, out_ref):
    """Pass 2: BN3 affine + sigmoid (EUP tanh) + elementwise gate, one store."""
    scale = coef_ref[0]                              # SMEM scalars
    shift = coef_ref[1]
    z = psi_ref[0].astype(jnp.float32) * scale + shift
    gate = 0.5 * jnp.tanh(0.5 * z) + 0.5             # sigmoid, no VALU divide
    out_ref[0] = (x_ref[0].astype(jnp.float32) * gate).astype(out_ref.dtype)


def _pick_tile(s_pad, target, min_tiles):
    """Largest 128-multiple T dividing s_pad with T <= target and s_pad/T >= min_tiles."""
    best = 128
    for cand in range(128, min(target, s_pad) + 1, 128):
        if s_pad % cand == 0 and (s_pad // cand) >= min_tiles:
            best = cand
    return best


def attention_block(g, x, params, *, tile_target=16384, io_dtype=None):
    """g: (N, F_g, H, W), x: (N, F_l, H, W) -> (N, F_l, H, W). NCHW in/out.

    io_dtype: optional HBM streaming dtype (e.g. jnp.bfloat16) for the big
    pixel tensors; kernels upcast to f32 right after load. Default f32.
    """
    N, F_g, H, W = g.shape
    _, F_l, _, _ = x.shape
    S = H * W
    M = N * S
    f32 = jnp.float32

    g3 = g.reshape(N, F_g, S).astype(f32)            # pure reshape, no transpose
    x3 = x.reshape(N, F_l, S).astype(f32)

    wg = params["wg"].astype(f32)                    # (F_int, F_g)
    wx = params["wx"].astype(f32)                    # (F_int, F_l)
    wp = params["wp"].astype(f32)                    # (1, F_int)
    F_int = wg.shape[0]

    # ---- analytic fold of Conv1x1 + training-mode BN (g and x branches) ----
    # Uncentered second moments so no centered N*C*S temps hit HBM:
    #   cov = E[v v^T] - mean mean^T ;  var_y[o] = w_o^T cov w_o
    #   (conv biases cancel exactly against the BN mean subtraction).
    mean_g = jnp.sum(g3, axis=(0, 2)) / M
    mean_x = jnp.sum(x3, axis=(0, 2)) / M
    m2_g = jnp.einsum("ncs,nds->cd", g3, g3) / M
    m2_x = jnp.einsum("ncs,nds->cd", x3, x3) / M
    cov_g = m2_g - jnp.outer(mean_g, mean_g)
    cov_x = m2_x - jnp.outer(mean_x, mean_x)
    var_yg = jnp.maximum(jnp.einsum("oc,cd,od->o", wg, cov_g, wg), 0.0)
    var_yx = jnp.maximum(jnp.einsum("oc,cd,od->o", wx, cov_x, wx), 0.0)
    a_g = params["gamma_g"].astype(f32) * jax.lax.rsqrt(var_yg + EPS)
    a_x = params["gamma_x"].astype(f32) * jax.lax.rsqrt(var_yx + EPS)
    # Stacked folded weights [Wg_eff | Wx_eff] and the single combined shift.
    wgx_eff = jnp.concatenate([wg * a_g[:, None], wx * a_x[:, None]], axis=1)
    b_gx = (params["beta_g"].astype(f32) - a_g * (wg @ mean_g)
            + params["beta_x"].astype(f32) - a_x * (wx @ mean_x))[:, None]
    # TODO(synk): this fold is training-mode BN (biased batch stats); eval-mode
    # running stats would fold differently.

    # ---- pad pixel axis to a lane multiple, pick a big tile ------------------
    S_pad = ((S + 127) // 128) * 128
    if S_pad != S:
        g3 = jnp.pad(g3, ((0, 0), (0, 0), (0, S_pad - S)))
        x3 = jnp.pad(x3, ((0, 0), (0, 0), (0, S_pad - S)))
    min_tiles = -(-4 // N)                           # keep N*n_t >= 4 for v7x 2 TCs
    T = _pick_tile(S_pad, tile_target, min_tiles)
    n_t = S_pad // T
    grid = (N, n_t)
    cparams = pltpu.CompilerParams(
        dimension_semantics=("parallel", "parallel"),
        vmem_limit_bytes=32 * 1024 * 1024,
    )

    stream_dt = f32 if io_dtype is None else io_dtype
    g_in = g3.astype(stream_dt)
    x_in = x3.astype(stream_dt)

    # ---- pass 1: psi logits + BN3 per-tile Chan partials ---------------------
    kernel1 = functools.partial(
        _gate_logit_kernel, tile=T,
        valid_pixels=(S if S_pad != S else None))
    psi_pre, stats = pl.pallas_call(
        kernel1,
        out_shape=(
            jax.ShapeDtypeStruct((N, 1, S_pad), f32),          # psi logits
            jax.ShapeDtypeStruct((N * n_t, 1, 128), f32),      # per-tile partials
        ),
        grid=grid,
        in_specs=[
            pl.BlockSpec((1, F_g, T), lambda n, t: (n, 0, t)),
            pl.BlockSpec((1, F_l, T), lambda n, t: (n, 0, t)),
            pl.BlockSpec((F_int, F_g + F_l), lambda n, t: (0, 0)),  # fetched once
            pl.BlockSpec((F_int, 1), lambda n, t: (0, 0)),
            pl.BlockSpec((1, F_int), lambda n, t: (0, 0)),
        ],
        out_specs=(
            pl.BlockSpec((1, 1, T), lambda n, t: (n, 0, t)),
            pl.BlockSpec((1, 1, 128), lambda n, t: (n * n_t + t, 0, 0)),
        ),
        compiler_params=cparams,
    )(g_in, x_in, wgx_eff, b_gx, wp)

    # ---- third BatchNorm (single channel) from Chan-combinable partials ------
    flat = stats.reshape(N * n_t, 128)
    cnt_i = flat[:, 0]
    sum_i = flat[:, 1]
    m2_i = flat[:, 2]
    total = jnp.sum(cnt_i)                           # == M (valid pixels only)
    mean_p = jnp.sum(sum_i) / total
    mean_i = sum_i / cnt_i
    var_p = (jnp.sum(m2_i) + jnp.sum(cnt_i * (mean_i - mean_p) ** 2)) / total
    var_p = jnp.maximum(var_p, 0.0)
    a_p = params["gamma_p"].astype(f32)[0] * jax.lax.rsqrt(var_p + EPS)
    shift_p = params["beta_p"].astype(f32)[0] - a_p * mean_p   # bp cancels too
    coef = jnp.stack([a_p, shift_p]).astype(f32)               # (2,) -> SMEM

    # ---- pass 2: sigmoid gate applied to x, single lane-dense store ----------
    out3 = pl.pallas_call(
        _gate_apply_kernel,
        out_shape=jax.ShapeDtypeStruct((N, F_l, S_pad), x.dtype),
        grid=grid,
        in_specs=[
            pl.BlockSpec(memory_space=pltpu.MemorySpace.SMEM),
            pl.BlockSpec((1, F_l, T), lambda n, t: (n, 0, t)),
            pl.BlockSpec((1, 1, T), lambda n, t: (n, 0, t)),
        ],
        out_specs=pl.BlockSpec((1, F_l, T), lambda n, t: (n, 0, t)),
        compiler_params=cparams,
    )(coef, x_in, psi_pre)

    if S_pad != S:
        out3 = out3[:, :, :S]
    return out3.reshape(N, F_l, H, W)


def init_params(key, F_g, F_l, F_int):
    """Synthetic parameters with the module's shapes (Conv2d weight as (Cout, Cin)).
    Conv biases are kept even though training-mode BN cancels them, so the test
    exercises that exact cancellation."""
    k = jax.random.split(key, 10)
    f32 = jnp.float32
    return {
        "wg": jax.random.normal(k[0], (F_int, F_g), f32) * 0.1,
        "bg": jax.random.normal(k[1], (F_int,), f32) * 0.1,
        "gamma_g": 1.0 + 0.1 * jax.random.normal(k[2], (F_int,), f32),
        "beta_g": 0.1 * jax.random.normal(k[3], (F_int,), f32),
        "wx": jax.random.normal(k[4], (F_int, F_l), f32) * 0.1,
        "bx": jax.random.normal(k[5], (F_int,), f32) * 0.1,
        "gamma_x": 1.0 + 0.1 * jax.random.normal(k[6], (F_int,), f32),
        "beta_x": 0.1 * jax.random.normal(k[7], (F_int,), f32),
        "wp": jax.random.normal(k[8], (1, F_int), f32) * 0.1,
        "bp": jax.random.normal(k[9], (1,), f32) * 0.1,
        "gamma_p": jnp.array([1.2], f32),
        "beta_p": jnp.array([0.1], f32),
    }


def _reference(g, x, p):
    """Pure-JAX NCHW reference mirroring the PyTorch module exactly
    (training-mode BN, biased variance, conv biases included)."""
    def conv1x1(w, b, v):
        return jnp.einsum("oc,nchw->nohw", w, v) + b[None, :, None, None]

    def bn(y, gamma, beta):
        m = jnp.mean(y, axis=(0, 2, 3), keepdims=True)
        v = jnp.mean((y - m) ** 2, axis=(0, 2, 3), keepdims=True)
        return ((y - m) / jnp.sqrt(v + EPS) * gamma[None, :, None, None]
                + beta[None, :, None, None])

    g1 = bn(conv1x1(p["wg"], p["bg"], g), p["gamma_g"], p["beta_g"])
    x1 = bn(conv1x1(p["wx"], p["bx"], x), p["gamma_x"], p["beta_x"])
    s = g1 + x1
    s = jnp.where(s >= 0, s, NEG_SLOPE * s)
    psi = bn(conv1x1(p["wp"], p["bp"], s), p["gamma_p"], p["beta_p"])
    psi = jax.nn.sigmoid(psi)
    return x * psi


if __name__ == "__main__":
    key = jax.random.PRNGKey(0)
    kg, kx, kp = jax.random.split(key, 3)

    N, F_g, F_l, F_int, H, W = 2, 4, 4, 8, 16, 16
    g = jax.random.normal(kg, (N, F_g, H, W), jnp.float32)
    x = jax.random.normal(kx, (N, F_l, H, W), jnp.float32)
    params = init_params(kp, F_g, F_l, F_int)

    out = jax.block_until_ready(jax.jit(attention_block)(g, x, params))

    ref = _reference(g, x, params)
    assert out.shape == (N, F_l, H, W)
    max_err = float(jnp.max(jnp.abs(out - ref)))
    assert jnp.allclose(out, ref, atol=1e-3, rtol=1e-3), f"max |err| = {max_err}"
    print("KERNEL_OK")
</pallas_src>

<mosaic_0001>
module attributes {stable_mosaic.version = 11 : i64} {
  func.func @_gate_logit_kernel(%arg0: i32, %arg1: i32, %arg2: memref<1x4x128xf32, #tpu.memory_space<vmem>>, %arg3: memref<1x4x128xf32, #tpu.memory_space<vmem>>, %arg4: memref<8x8xf32, #tpu.memory_space<vmem>>, %arg5: memref<8x1xf32, #tpu.memory_space<vmem>>, %arg6: memref<1x8xf32, #tpu.memory_space<vmem>>, %arg7: memref<1x1x128xf32, #tpu.memory_space<vmem>>, %arg8: memref<1x1x128xf32, #tpu.memory_space<vmem>>) attributes {dimension_semantics = [#tpu.dimension_semantics<parallel>, #tpu.dimension_semantics<parallel>], iteration_bounds = array<i64: 2, 2>, scalar_prefetch = 0 : i64, scratch_operands = 0 : i64, tpu.core_type = #tpu.core_type<tc>, window_params = [{transform_indices = @transform_0, window_bounds = array<i64: 1, 4, 128>}, {transform_indices = @transform_1, window_bounds = array<i64: 1, 4, 128>}, {pipeline_mode = #tpu.pipeline_mode<synchronous>, transform_indices = @transform_2, window_bounds = array<i64: 8, 8>}, {pipeline_mode = #tpu.pipeline_mode<synchronous>, transform_indices = @transform_3, window_bounds = array<i64: 8, 1>}, {pipeline_mode = #tpu.pipeline_mode<synchronous>, transform_indices = @transform_4, window_bounds = array<i64: 1, 8>}, {transform_indices = @transform_5, window_bounds = array<i64: 1, 1, 128>}, {transform_indices = @transform_6, window_bounds = array<i64: 1, 1, 128>}]} {
    %c0 = arith.constant 0 : index
    %c0_0 = arith.constant 0 : index
    %c0_1 = arith.constant 0 : index
    %0 = vector.load %arg2[%c0, %c0_0, %c0_1] : memref<1x4x128xf32, #tpu.memory_space<vmem>>, vector<1x4x128xf32>
    %1 = vector.shape_cast %0 : vector<1x4x128xf32> to vector<4x128xf32>
    %c0_2 = arith.constant 0 : index
    %c0_3 = arith.constant 0 : index
    %c0_4 = arith.constant 0 : index
    %2 = vector.load %arg3[%c0_2, %c0_3, %c0_4] : memref<1x4x128xf32, #tpu.memory_space<vmem>>, vector<1x4x128xf32>
    %3 = vector.shape_cast %2 : vector<1x4x128xf32> to vector<4x128xf32>
    %c0_5 = arith.constant 0 : index
    %c0_6 = arith.constant 0 : index
    %4 = vector.load %arg4[%c0_5, %c0_6] : memref<8x8xf32, #tpu.memory_space<vmem>>, vector<8x8xf32>
    %5 = vector.extract_strided_slice %4 {offsets = [0, 0], sizes = [8, 1], strides = [1, 1]} : vector<8x8xf32> to vector<8x1xf32>
    %6 = vector.extract_strided_slice %1 {offsets = [0, 0], sizes = [1, 128], strides = [1, 1]} : vector<4x128xf32> to vector<1x128xf32>
    %7 = vector.broadcast %5 : vector<8x1xf32> to vector<8x128xf32>
    %8 = vector.broadcast %6 : vector<1x128xf32> to vector<8x128xf32>
    %9 = arith.mulf %7, %8 : vector<8x128xf32>
    %10 = vector.extract_strided_slice %4 {offsets = [0, 1], sizes = [8, 1], strides = [1, 1]} : vector<8x8xf32> to vector<8x1xf32>
    %11 = vector.extract_strided_slice %1 {offsets = [1, 0], sizes = [1, 128], strides = [1, 1]} : vector<4x128xf32> to vector<1x128xf32>
    %12 = vector.broadcast %10 : vector<8x1xf32> to vector<8x128xf32>
    %13 = vector.broadcast %11 : vector<1x128xf32> to vector<8x128xf32>
    %14 = arith.mulf %12, %13 : vector<8x128xf32>
    %15 = arith.addf %9, %14 : vector<8x128xf32>
    %16 = vector.extract_strided_slice %4 {offsets = [0, 2], sizes = [8, 1], strides = [1, 1]} : vector<8x8xf32> to vector<8x1xf32>
    %17 = vector.extract_strided_slice %1 {offsets = [2, 0], sizes = [1, 128], strides = [1, 1]} : vector<4x128xf32> to vector<1x128xf32>
    %18 = vector.broadcast %16 : vector<8x1xf32> to vector<8x128xf32>
    %19 = vector.broadcast %17 : vector<1x128xf32> to vector<8x128xf32>
    %20 = arith.mulf %18, %19 : vector<8x128xf32>
    %21 = arith.addf %15, %20 : vector<8x128xf32>
    %22 = vector.extract_strided_slice %4 {offsets = [0, 3], sizes = [8, 1], strides = [1, 1]} : vector<8x8xf32> to vector<8x1xf32>
    %23 = vector.extract_strided_slice %1 {offsets = [3, 0], sizes = [1, 128], strides = [1, 1]} : vector<4x128xf32> to vector<1x128xf32>
    %24 = vector.broadcast %22 : vector<8x1xf32> to vector<8x128xf32>
    %25 = vector.broadcast %23 : vector<1x128xf32> to vector<8x128xf32>
    %26 = arith.mulf %24, %25 : vector<8x128xf32>
    %27 = arith.addf %21, %26 : vector<8x128xf32>
    %28 = vector.extract_strided_slice %4 {offsets = [0, 4], sizes = [8, 1], strides = [1, 1]} : vector<8x8xf32> to vector<8x1xf32>
    %29 = vector.extract_strided_slice %3 {offsets = [0, 0], sizes = [1, 128], strides = [1, 1]} : vector<4x128xf32> to vector<1x128xf32>
    %30 = vector.broadcast %28 : vector<8x1xf32> to vector<8x128xf32>
    %31 = vector.broadcast %29 : vector<1x128xf32> to vector<8x128xf32>
    %32 = arith.mulf %30, %31 : vector<8x128xf32>
    %33 = arith.addf %27, %32 : vector<8x128xf32>
    %34 = vector.extract_strided_slice %4 {offsets = [0, 5], sizes = [8, 1], strides = [1, 1]} : vector<8x8xf32> to vector<8x1xf32>
    %35 = vector.extract_strided_slice %3 {offsets = [1, 0], sizes = [1, 128], strides = [1, 1]} : vector<4x128xf32> to vector<1x128xf32>
    %36 = vector.broadcast %34 : vector<8x1xf32> to vector<8x128xf32>
    %37 = vector.broadcast %35 : vector<1x128xf32> to vector<8x128xf32>
    %38 = arith.mulf %36, %37 : vector<8x128xf32>
    %39 = arith.addf %33, %38 : vector<8x128xf32>
    %40 = vector.extract_strided_slice %4 {offsets = [0, 6], sizes = [8, 1], strides = [1, 1]} : vector<8x8xf32> to vector<8x1xf32>
    %41 = vector.extract_strided_slice %3 {offsets = [2, 0], sizes = [1, 128], strides = [1, 1]} : vector<4x128xf32> to vector<1x128xf32>
    %42 = vector.broadcast %40 : vector<8x1xf32> to vector<8x128xf32>
    %43 = vector.broadcast %41 : vector<1x128xf32> to vector<8x128xf32>
    %44 = arith.mulf %42, %43 : vector<8x128xf32>
    %45 = arith.addf %39, %44 : vector<8x128xf32>
    %46 = vector.extract_strided_slice %4 {offsets = [0, 7], sizes = [8, 1], strides = [1, 1]} : vector<8x8xf32> to vector<8x1xf32>
    %47 = vector.extract_strided_slice %3 {offsets = [3, 0], sizes = [1, 128], strides = [1, 1]} : vector<4x128xf32> to vector<1x128xf32>
    %48 = vector.broadcast %46 : vector<8x1xf32> to vector<8x128xf32>
    %49 = vector.broadcast %47 : vector<1x128xf32> to vector<8x128xf32>
    %50 = arith.mulf %48, %49 : vector<8x128xf32>
    %51 = arith.addf %45, %50 : vector<8x128xf32>
    %c0_7 = arith.constant 0 : index
    %c0_8 = arith.constant 0 : index
    %52 = vector.load %arg5[%c0_7, %c0_8] : memref<8x1xf32, #tpu.memory_space<vmem>>, vector<8x1xf32>
    %53 = vector.broadcast %52 : vector<8x1xf32> to vector<8x128xf32>
    %54 = arith.addf %51, %53 : vector<8x128xf32>
    %cst = arith.constant 0.000000e+00 : f32
    %55 = vector.broadcast %cst : f32 to vector<8x128xf32>
    %56 = arith.cmpf oge, %54, %55 : vector<8x128xf32>
    %cst_9 = arith.constant 0.00999999977 : f32
    %57 = vector.broadcast %cst_9 : f32 to vector<8x128xf32>
    %58 = arith.mulf %57, %54 : vector<8x128xf32>
    %59 = arith.select %56, %54, %58 : vector<8x128xi1>, vector<8x128xf32>
    %c0_10 = arith.constant 0 : index
    %c0_11 = arith.constant 0 : index
    %60 = vector.load %arg6[%c0_10, %c0_11] : memref<1x8xf32, #tpu.memory_space<vmem>>, vector<1x8xf32>
    %61 = vector.extract_strided_slice %60 {offsets = [0, 0], sizes = [1, 1], strides = [1, 1]} : vector<1x8xf32> to vector<1x1xf32>
    %62 = vector.extract_strided_slice %59 {offsets = [0, 0], sizes = [1, 128], strides = [1, 1]} : vector<8x128xf32> to vector<1x128xf32>
    %63 = vector.broadcast %61 : vector<1x1xf32> to vector<1x128xf32>
    %64 = arith.mulf %63, %62 : vector<1x128xf32>
    %65 = vector.extract_strided_slice %60 {offsets = [0, 1], sizes = [1, 1], strides = [1, 1]} : vector<1x8xf32> to vector<1x1xf32>
    %66 = vector.extract_strided_slice %59 {offsets = [1, 0], sizes = [1, 128], strides = [1, 1]} : vector<8x128xf32> to vector<1x128xf32>
    %67 = vector.broadcast %65 : vector<1x1xf32> to vector<1x128xf32>
    %68 = arith.mulf %67, %66 : vector<1x128xf32>
    %69 = arith.addf %64, %68 : vector<1x128xf32>
    %70 = vector.extract_strided_slice %60 {offsets = [0, 2], sizes = [1, 1], strides = [1, 1]} : vector<1x8xf32> to vector<1x1xf32>
    %71 = vector.extract_strided_slice %59 {offsets = [2, 0], sizes = [1, 128], strides = [1, 1]} : vector<8x128xf32> to vector<1x128xf32>
    %72 = vector.broadcast %70 : vector<1x1xf32> to vector<1x128xf32>
    %73 = arith.mulf %72, %71 : vector<1x128xf32>
    %74 = arith.addf %69, %73 : vector<1x128xf32>
    %75 = vector.extract_strided_slice %60 {offsets = [0, 3], sizes = [1, 1], strides = [1, 1]} : vector<1x8xf32> to vector<1x1xf32>
    %76 = vector.extract_strided_slice %59 {offsets = [3, 0], sizes = [1, 128], strides = [1, 1]} : vector<8x128xf32> to vector<1x128xf32>
    %77 = vector.broadcast %75 : vector<1x1xf32> to vector<1x128xf32>
    %78 = arith.mulf %77, %76 : vector<1x128xf32>
    %79 = arith.addf %74, %78 : vector<1x128xf32>
    %80 = vector.extract_strided_slice %60 {offsets = [0, 4], sizes = [1, 1], strides = [1, 1]} : vector<1x8xf32> to vector<1x1xf32>
    %81 = vector.extract_strided_slice %59 {offsets = [4, 0], sizes = [1, 128], strides = [1, 1]} : vector<8x128xf32> to vector<1x128xf32>
    %82 = vector.broadcast %80 : vector<1x1xf32> to vector<1x128xf32>
    %83 = arith.mulf %82, %81 : vector<1x128xf32>
    %84 = arith.addf %79, %83 : vector<1x128xf32>
    %85 = vector.extract_strided_slice %60 {offsets = [0, 5], sizes = [1, 1], strides = [1, 1]} : vector<1x8xf32> to vector<1x1xf32>
    %86 = vector.extract_strided_slice %59 {offsets = [5, 0], sizes = [1, 128], strides = [1, 1]} : vector<8x128xf32> to vector<1x128xf32>
    %87 = vector.broadcast %85 : vector<1x1xf32> to vector<1x128xf32>
    %88 = arith.mulf %87, %86 : vector<1x128xf32>
    %89 = arith.addf %84, %88 : vector<1x128xf32>
    %90 = vector.extract_strided_slice %60 {offsets = [0, 6], sizes = [1, 1], strides = [1, 1]} : vector<1x8xf32> to vector<1x1xf32>
    %91 = vector.extract_strided_slice %59 {offsets = [6, 0], sizes = [1, 128], strides = [1, 1]} : vector<8x128xf32> to vector<1x128xf32>
    %92 = vector.broadcast %90 : vector<1x1xf32> to vector<1x128xf32>
    %93 = arith.mulf %92, %91 : vector<1x128xf32>
    %94 = arith.addf %89, %93 : vector<1x128xf32>
    %95 = vector.extract_strided_slice %60 {offsets = [0, 7], sizes = [1, 1], strides = [1, 1]} : vector<1x8xf32> to vector<1x1xf32>
    %96 = vector.extract_strided_slice %59 {offsets = [7, 0], sizes = [1, 128], strides = [1, 1]} : vector<8x128xf32> to vector<1x128xf32>
    %97 = vector.broadcast %95 : vector<1x1xf32> to vector<1x128xf32>
    %98 = arith.mulf %97, %96 : vector<1x128xf32>
    %99 = arith.addf %94, %98 : vector<1x128xf32>
    %c0_12 = arith.constant 0 : index
    %c0_13 = arith.constant 0 : index
    %c0_14 = arith.constant 0 : index
    %100 = vector.load %arg7[%c0_12, %c0_13, %c0_14] : memref<1x1x128xf32, #tpu.memory_space<vmem>>, vector<1x1x128xf32>
    %101 = vector.shape_cast %100 : vector<1x1x128xf32> to vector<1x128xf32>
    %102 = vector.shape_cast %99 : vector<1x128xf32> to vector<1x1x128xf32>
    tpu.vector_store %arg7[%c0_12, %c0_13, %c0_14], %102 {strides = array<i32>} : memref<1x1x128xf32, #tpu.memory_space<vmem>>, vector<1x1x128xf32>,
    %cst_15 = arith.constant 1.280000e+02 : f32
    %103 = vector.broadcast %cst_15 : f32 to vector<1x1xf32>
    %cst_16 = arith.constant dense<0.000000e+00> : vector<1xf32>
    %104 = vector.multi_reduction <add>, %99, %cst_16 [1] : vector<1x128xf32> to vector<1xf32>
    %105 = vector.shape_cast %104 : vector<1xf32> to vector<1x1xf32>
    %106 = arith.divf %105, %103 : vector<1x1xf32>
    %107 = vector.broadcast %106 : vector<1x1xf32> to vector<1x128xf32>
    %108 = arith.subf %99, %107 : vector<1x128xf32>
    %109 = arith.mulf %108, %108 : vector<1x128xf32>
    %cst_17 = arith.constant dense<0.000000e+00> : vector<1xf32>
    %110 = vector.multi_reduction <add>, %109, %cst_17 [1] : vector<1x128xf32> to vector<1xf32>
    %111 = vector.shape_cast %110 : vector<1xf32> to vector<1x1xf32>
    %112 = tpu.iota {dimensions = array<i32: 1>} : vector<1x128xi32>
    %c0_i32 = arith.constant 0 : i32
    %113 = vector.broadcast %c0_i32 : i32 to vector<1x128xi32>
    %114 = arith.cmpi eq, %112, %113 : vector<1x128xi32>
    %cst_18 = arith.constant 0.000000e+00 : f32
    %115 = vector.shape_cast %103 : vector<1x1xf32> to vector<1x1xf32>
    %116 = vector.broadcast %115 : vector<1x1xf32> to vector<1x128xf32>
    %117 = vector.broadcast %cst_18 : f32 to vector<1x128xf32>
    %118 = arith.select %114, %116, %117 : vector<1x128xi1>, vector<1x128xf32>
    %c1_i32 = arith.constant 1 : i32
    %119 = vector.broadcast %c1_i32 : i32 to vector<1x128xi32>
    %120 = arith.cmpi eq, %112, %119 : vector<1x128xi32>
    %cst_19 = arith.constant 0.000000e+00 : f32
    %121 = vector.shape_cast %105 : vector<1x1xf32> to vector<1x1xf32>
    %122 = vector.broadcast %121 : vector<1x1xf32> to vector<1x128xf32>
    %123 = vector.broadcast %cst_19 : f32 to vector<1x128xf32>
    %124 = arith.select %120, %122, %123 : vector<1x128xi1>, vector<1x128xf32>
    %125 = arith.addf %118, %124 : vector<1x128xf32>
    %c2_i32 = arith.constant 2 : i32
    %126 = vector.broadcast %c2_i32 : i32 to vector<1x128xi32>
    %127 = arith.cmpi eq, %112, %126 : vector<1x128xi32>
    %cst_20 = arith.constant 0.000000e+00 : f32
    %128 = vector.shape_cast %111 : vector<1x1xf32> to vector<1x1xf32>
    %129 = vector.broadcast %128 : vector<1x1xf32> to vector<1x128xf32>
    %130 = vector.broadcast %cst_20 : f32 to vector<1x128xf32>
    %131 = arith.select %127, %129, %130 : vector<1x128xi1>, vector<1x128xf32>
    %132 = arith.addf %125, %131 : vector<1x128xf32>
    %c0_21 = arith.constant 0 : index
    %c0_22 = arith.constant 0 : index
    %c0_23 = arith.constant 0 : index
    %133 = vector.load %arg8[%c0_21, %c0_22, %c0_23] : memref<1x1x128xf32, #tpu.memory_space<vmem>>, vector<1x1x128xf32>
    %134 = vector.shape_cast %133 : vector<1x1x128xf32> to vector<1x128xf32>
    %135 = vector.shape_cast %132 : vector<1x128xf32> to vector<1x1x128xf32>
    tpu.vector_store %arg8[%c0_21, %c0_22, %c0_23], %135 {strides = array<i32>} : memref<1x1x128xf32, #tpu.memory_space<vmem>>, vector<1x1x128xf32>,
    return
  }
  func.func @transform_0(%arg0: i32, %arg1: i32) -> (i32, i32, i32) {
    %c0_i32 = arith.constant 0 : i32
    %c0_i32_0 = arith.constant 0 : i32
    return %arg0, %c0_i32, %arg1 : i32, i32, i32
  }
  func.func @transform_1(%arg0: i32, %arg1: i32) -> (i32, i32, i32) {
    %c0_i32 = arith.constant 0 : i32
    %c0_i32_0 = arith.constant 0 : i32
    return %arg0, %c0_i32, %arg1 : i32, i32, i32
  }
  func.func @transform_2(%arg0: i32, %arg1: i32) -> (i32, i32) {
    %c0_i32 = arith.constant 0 : i32
    %c0_i32_0 = arith.constant 0 : i32
    %c0_i32_1 = arith.constant 0 : i32
    return %c0_i32, %c0_i32_0 : i32, i32
  }
  func.func @transform_3(%arg0: i32, %arg1: i32) -> (i32, i32) {
    %c0_i32 = arith.constant 0 : i32
    %c0_i32_0 = arith.constant 0 : i32
    %c0_i32_1 = arith.constant 0 : i32
    return %c0_i32, %c0_i32_0 : i32, i32
  }
  func.func @transform_4(%arg0: i32, %arg1: i32) -> (i32, i32) {
    %c0_i32 = arith.constant 0 : i32
    %c0_i32_0 = arith.constant 0 : i32
    %c0_i32_1 = arith.constant 0 : i32
    return %c0_i32, %c0_i32_0 : i32, i32
  }
  func.func @transform_5(%arg0: i32, %arg1: i32) -> (i32, i32, i32) {
    %c0_i32 = arith.constant 0 : i32
    %c0_i32_0 = arith.constant 0 : i32
    return %arg0, %c0_i32, %arg1 : i32, i32, i32
  }
  func.func @transform_6(%arg0: i32, %arg1: i32) -> (i32, i32, i32) {
    %c2_i32 = arith.constant 2 : i32
    %0 = arith.muli %arg0, %c2_i32 : i32
    %1 = arith.addi %0, %arg1 : i32
    %c0_i32 = arith.constant 0 : i32
    %c0_i32_0 = arith.constant 0 : i32
    %c0_i32_1 = arith.constant 0 : i32
    return %1, %c0_i32, %c0_i32_0 : i32, i32, i32
  }
}

module attributes {stable_mosaic.version = 11 : i64} {
  func.func @_gate_apply_kernel(%arg0: i32, %arg1: i32, %arg2: memref<2xf32, #tpu.memory_space<smem>>, %arg3: memref<1x4x128xf32, #tpu.memory_space<vmem>>, %arg4: memref<1x1x128xf32, #tpu.memory_space<vmem>>, %arg5: memref<1x4x128xf32, #tpu.memory_space<vmem>>) attributes {dimension_semantics = [#tpu.dimension_semantics<parallel>, #tpu.dimension_semantics<parallel>], iteration_bounds = array<i64: 2, 2>, scalar_prefetch = 0 : i64, scratch_operands = 0 : i64, tpu.core_type = #tpu.core_type<tc>, window_params = [{transform_indices = @transform_0, window_bounds = array<i64: 2>}, {transform_indices = @transform_1, window_bounds = array<i64: 1, 4, 128>}, {transform_indices = @transform_2, window_bounds = array<i64: 1, 1, 128>}, {transform_indices = @transform_3, window_bounds = array<i64: 1, 4, 128>}]} {
    %c0 = arith.constant 0 : index
    %0 = memref.load %arg2[%c0] : memref<2xf32, #tpu.memory_space<smem>>
    %c1 = arith.constant 1 : index
    %1 = memref.load %arg2[%c1] : memref<2xf32, #tpu.memory_space<smem>>
    %c0_0 = arith.constant 0 : index
    %c0_1 = arith.constant 0 : index
    %c0_2 = arith.constant 0 : index
    %2 = vector.load %arg4[%c0_0, %c0_1, %c0_2] : memref<1x1x128xf32, #tpu.memory_space<vmem>>, vector<1x1x128xf32>
    %3 = vector.shape_cast %2 : vector<1x1x128xf32> to vector<1x128xf32>
    %4 = vector.broadcast %0 : f32 to vector<1x128xf32>
    %5 = arith.mulf %3, %4 : vector<1x128xf32>
    %6 = vector.broadcast %1 : f32 to vector<1x128xf32>
    %7 = arith.addf %5, %6 : vector<1x128xf32>
    %cst = arith.constant 5.000000e-01 : f32
    %8 = vector.broadcast %cst : f32 to vector<1x128xf32>
    %9 = arith.mulf %8, %7 : vector<1x128xf32>
    %10 = math.tanh %9 : vector<1x128xf32>
    %cst_3 = arith.constant 5.000000e-01 : f32
    %11 = vector.broadcast %cst_3 : f32 to vector<1x128xf32>
    %12 = arith.mulf %11, %10 : vector<1x128xf32>
    %cst_4 = arith.constant 5.000000e-01 : f32
    %13 = vector.broadcast %cst_4 : f32 to vector<1x128xf32>
    %14 = arith.addf %12, %13 : vector<1x128xf32>
    %c0_5 = arith.constant 0 : index
    %c0_6 = arith.constant 0 : index
    %c0_7 = arith.constant 0 : index
    %15 = vector.load %arg3[%c0_5, %c0_6, %c0_7] : memref<1x4x128xf32, #tpu.memory_space<vmem>>, vector<1x4x128xf32>
    %16 = vector.shape_cast %15 : vector<1x4x128xf32> to vector<4x128xf32>
    %17 = vector.broadcast %14 : vector<1x128xf32> to vector<4x128xf32>
    %18 = arith.mulf %16, %17 : vector<4x128xf32>
    %c0_8 = arith.constant 0 : index
    %c0_9 = arith.constant 0 : index
    %c0_10 = arith.constant 0 : index
    %19 = vector.load %arg5[%c0_8, %c0_9, %c0_10] : memref<1x4x128xf32, #tpu.memory_space<vmem>>, vector<1x4x128xf32>
    %20 = vector.shape_cast %19 : vector<1x4x128xf32> to vector<4x128xf32>
    %21 = vector.shape_cast %18 : vector<4x128xf32> to vector<1x4x128xf32>
    tpu.vector_store %arg5[%c0_8, %c0_9, %c0_10], %21 {strides = array<i32>} : memref<1x4x128xf32, #tpu.memory_space<vmem>>, vector<1x4x128xf32>,
    return
  }
  func.func @transform_0(%arg0: i32, %arg1: i32) -> i32 {
    %c0_i32 = arith.constant 0 : i32
    %c0_i32_0 = arith.constant 0 : i32
    return %c0_i32 : i32
  }
  func.func @transform_1(%arg0: i32, %arg1: i32) -> (i32, i32, i32) {
    %c0_i32 = arith.constant 0 : i32
    %c0_i32_0 = arith.constant 0 : i32
    return %arg0, %c0_i32, %arg1 : i32, i32, i32
  }
  func.func @transform_2(%arg0: i32, %arg1: i32) -> (i32, i32, i32) {
    %c0_i32 = arith.constant 0 : i32
    %c0_i32_0 = arith.constant 0 : i32
    return %arg0, %c0_i32, %arg1 : i32, i32, i32
  }
  func.func @transform_3(%arg0: i32, %arg1: i32) -> (i32, i32, i32) {
    %c0_i32 = arith.constant 0 : i32
    %c0_i32_0 = arith.constant 0 : i32
    return %arg0, %c0_i32, %arg1 : i32, i32, i32
  }
}

</mosaic_0001>

<bundles_post_ra>
// kernel: attention_block.3
= control target key start
LH: loop header
LB: loop body
LE: loop exit
PB: predicated region body
PF: predicated region fallthrough
CT: control target
= control target key end

     0   :  { %8 = vsyncpa [#allocation3], 0  ;;  %s526_s12 = smov 0   ;;  %s528_s13 = smov 0   ;;  %s610_s0 = inlined_call_operand.vmem [shape: f32[2], index: 0, kind: input, shape index: {}]   ;;  %s611_s1 = inlined_call_operand.vmem [shape: f32[2,4,256], index: 1, kind: input, shape index: {}]   ;;  %s612_s2 = inlined_call_operand.vmem [shape: f32[2,1,256], index: 2, kind: input, shape index: {}]   ;;  %s613_s3 = inlined_call_operand.vmem [shape: f32[2,4,256], index: 3, kind: output, shape index: {}]  }
   0x1   :  { %s530_s14 = smov 0   ;;  %s532_s15 = smov 0  }
   0x2   :  { %s534_s16 = smov 0  }
   0x3 LB: > { %s378_s17 = sadd.s32 4294967295, %s503_s16   ;;  %s23_s18 = sadd.s32 1, %s495_s14  ;;  %s503_s16 = sphi %s534_s16, %s14_s16   ;;  %s499_s15 = sphi %s532_s15, %s619_s15   ;;  %s495_s14 = sphi %s530_s14, %s618_s14   ;;  %s491_s13 = sphi %s528_s13, %s617_s13   ;;  %s487_s12 = sphi %s526_s12, %s616_s12  }
   0x4   : > { %p24_p0 = scmp.ge.s32.totalorder %s23_s18, 2  ;;  %s26_s19 = sadd.s32 1, %s499_s15 }
   0x5   : > { %p380_p1 = scmp.ge.s32.totalorder %s503_s16, 1  ;;  %p136_p2 = scmp.lt.s32.totalorder %s503_s16, 5 }
   0x6   : > { %s621_s18 = smov (%p24_p0, %s23_s18), 0  ;;  %s623_s19 = smov (!%p24_p0, %s26_s19), %s499_s15 }
   0x7   : > { %p559_p3 = pnand %p380_p1, %p136_p2  ;;  %p28_p4 = scmp.ge.s32.totalorder %s623_s19, 2 }
   0x8   : > { %p563_p5 = scmp.eq.s32.totalorder %s378_s17, 0  ;;  %s149_s24 = sshll.u32 %s610_s0, 4  ;;  %s150_s24 = int_to_ptr.vmem [resolvable:$true] %s149_s24 }
   0x9   : > { %p397_p6 = pneg %p559_p3  ;;  %s625_s19 = smov (%p28_p4, %s623_s19), 0 }
   0xa   : > { %s446_s25 = scalar_lea.vmem %s150_s24, 16  ;;  %p454_p12 = scmp.lt.s32.totalorder %s150_s24, %s150_s24 }
   0xb   : > { %p398_p7 = pnand %p563_p5, %p397_p6  ;;  %p447_p8 = scmp.ne.s32.totalorder %s150_s24, %s446_s25 }
   0xc   : > { %p455_p13 = scmp.lt.s32.totalorder %s446_s25, %s446_s25 }
   0xd   : > { %p448_p9 = pneg %p398_p7 }
   0xe   : > { %p456_p0 = por %p455_p13, %p454_p12 }
   0xf   : > { %p449_p10 = pnand %p448_p9, %p447_p8 }
  0x11   : > { %p450_p11 = pneg %p449_p10 }
  0x13   : > { %p457_p1 = pnand %p456_p0, %p450_p11 }
  0x15   : > { %460 = shalt.err (!%p457_p1)
}
  0x16   : > { %s505_s26 = smov [#allocation2]   ;;  %183 = sbr.rel (%p559_p3) target bundleno = 66 (0x42), region = 32 }
  0x17   : > { %400 = dma.vmem_to_smem (!%p398_p7), %s150_s24, 16, %s505_s26, [#allocation3]  }
  0x1d   : > { %482 = dma.done.wait (%p563_p5), [#allocation3], 16  }
  0x1e   : > { %484 = vsyncadd (%p563_p5), [#allocation3], 4294967280 }
  0x1f   : > { %189 = sfence }
  0x20   : > { %p221_p2 = scmp.lt.s32.totalorder %s491_s13, 1  ;;  %p223_p4 = scmp.lt.s32.totalorder %s487_s12, 1  ;;  %v257_v6 = vlaneseq }
  0x21   : > { %s244_s27 = sld [smem:[#allocation2]]  ;;  %s390_s28 = sld [smem:[#allocation2 + $0x1]] }
  0x22   : > { %s627_s13 = smov (!%p221_p2, %s491_s13), 1  ;;  %s629_s12 = smov (!%p223_p4, %s487_s12), 1  ;;  %v258_v7 = vshrl.u32 %v257_v6, 7 }
  0x23   : > { %s385_s29 = sshll.u32 %s627_s13, 1 }
  0x24   : > { %s226_s30 = sadd.s32 %s385_s29, %s629_s12  ;;  %v259_v10 = vsub.s32 0, %v258_v7 }
  0x25   : > { %s235_s6 = scalar_lea.vmem %s612_s2, %s226_s30  ;;  %s386_s7 = sshll.u32 %s226_s30, 2 }
  0x26   : > { %v246_v0 = vld [vmem:[%s235_s6] sm:$0x1]  ;;  %s228_s10 = scalar_lea.vmem %s611_s1, %s386_s7  ;;  %s243_s13 = scalar_lea.vmem %s613_s3, %s386_s7 }
  0x27   : > { %v247_v1 = vstv %s244_s27  ;;  %v249_v2 = vstv %s390_s28  ;;  %v255_v12 = vld [vmem:[%s228_s10] sm:$0xf] }
  0x28   : > { %v248_v3 = vmul.f32 %v247_v1, %v246_v0 }
  0x2a   : > { %v250_v4 = vadd.f32 %v249_v2, %v248_v3 }
  0x2c   : > { %v251_v5 = vmul.f32 0.5, %v250_v4 }
  0x2e   : > { %444 = vtanh.f32 %v251_v5 }
  0x38   : > { %v445_v8 = vpop.eup %444 }
  0x39   : > { %v253_v9 = vmul.f32 0.5, %v445_v8 }
  0x3b   : > { %v254_v11 = vadd.f32 0.5, %v253_v9 }
  0x3d   : > { %v260_v13 = vrot.slane %v254_v11, %v259_v10 }
  0x3f   : > { %v262_v14 = vmul.f32 %v260_v13, %v255_v12 }
  0x41   : > { %263 = vst [vmem:[%s243_s13] sm:$0xf] %v262_v14 }
  0x42 PF: > { %s14_s16 = sadd.s32 1, %s503_s16   ;;  %s616_s12 = smov %s495_s14 }
  0x43   : > { %p11_p3 = scmp.ge.s32.totalorder %s14_s16, 6   ;;  %s617_s13 = smov %s499_s15 }
  0x44   : > { %s618_s14 = smov %s621_s18  ;;  %s619_s15 = smov %s625_s19 }
  0x45   :  { %13 = sbr.rel (!%p11_p3) target bundleno = 3 (0x3), region = 70 }
  0x4c   :  { %291 = vsyncpa [#allocation3], 1 }
  0x4d   :  { %293 = vsyncpa [#allocation3 + $0x1], 1 }

// kernel: attention_block.2
= control target key start
LH: loop header
LB: loop body
LE: loop exit
PB: predicated region body
PF: predicated region fallthrough
CT: control target
= control target key end

     0   :  { %s845_s21 = smov 0   ;;  %s847_s22 = smov 0   ;;  %s941_s0 = inlined_call_operand.vmem [shape: f32[2,4,256], index: 0, kind: input, shape index: {}]   ;;  %s942_s1 = inlined_call_operand.vmem [shape: f32[2,4,256], index: 1, kind: input, shape index: {}]   ;;  %s943_s2 = inlined_call_operand.vmem [shape: f32[8,8], index: 2, kind: input, shape index: {}]   ;;  %s944_s3 = inlined_call_operand.vmem [shape: f32[8,1], index: 3, kind: input, shape index: {}]   ;;  %s945_s4 = inlined_call_operand.vmem [shape: f32[1,8], index: 4, kind: input, shape index: {}]   ;;  %s946_s5 = inlined_call_operand.vmem [shape: f32[2,1,256], index: 5, kind: output, shape index: {0}]   ;;  %s947_s6 = inlined_call_operand.vmem [shape: f32[4,1,128], index: 6, kind: output, shape index: {1}]  }
   0x1   :  { %s849_s23 = smov 0   ;;  %s851_s24 = smov 0  }
   0x2   :  { %s853_s25 = smov 0  }
   0x3 LB: > { %s26_s26 = sadd.s32 1, %s791_s23  ;;  %s29_s27 = sadd.s32 1, %s795_s24  ;;  %s799_s25 = sphi %s853_s25, %s17_s25   ;;  %s795_s24 = sphi %s851_s24, %s951_s24   ;;  %s791_s23 = sphi %s849_s23, %s950_s23   ;;  %s787_s22 = sphi %s847_s22, %s949_s22   ;;  %s783_s21 = sphi %s845_s21, %s948_s21  }
   0x4   : > { %p27_p0 = scmp.ge.s32.totalorder %s26_s26, 2  ;;  %p685_p1 = scmp.ge.s32.totalorder %s799_s25, 1 }
   0x5   : > { %p253_p2 = scmp.lt.s32.totalorder %s799_s25, 5 }
   0x6   : > { %s953_s26 = smov (%p27_p0, %s26_s26), 0  ;;  %s955_s27 = smov (!%p27_p0, %s29_s27), %s795_s24 }
   0x7   : > { %p254_p3 = pnand %p685_p1, %p253_p2  ;;  %p31_p4 = scmp.ge.s32.totalorder %s955_s27, 2 }
   0x8   : > { %v333_v0 = vld [vmem:[%s943_s2] sm:$0xff] (!%p254_p3)  ;;  %v801_v1 = vmov (!%p254_p3), 2   ;;  %v802_v2 = vmov (!%p254_p3), 0   ;;  %v803_v3 = vmov (!%p254_p3), 3   ;;  %v804_v4 = vmov (!%p254_p3), 1   ;;  %p301_p5 = scmp.lt.s32.totalorder (!%p254_p3), %s787_s22, 1 }
   0x9   : > { %s957_s27 = smov (%p31_p4, %s955_s27), 0  ;;  %257 = sbr.rel (%p254_p3) target bundleno = 493 (0x1ed), region = 40 }
   0xa   : > { %745 = vset.pattern.permute.xlu1 (!%p254_p3), %v801_v1  ;;  %743 = vset.pattern.permute.xlu0 (!%p254_p3), %v802_v2  ;;  %v805_v5 = vmov (!%p254_p3), 4   ;;  %v806_v6 = vmov (!%p254_p3), 5   ;;  %v414_v7 = vld [vmem:[%s944_s3] sm:$0xff] (!%p254_p3)  ;;  %v807_v8 = vmov (!%p254_p3), 6   ;;  %v808_v10 = vmov (!%p254_p3), 7   ;;  %p303_p6 = scmp.lt.s32.totalorder (!%p254_p3), %s783_s21, 1 }
   0xb   : > { %355 = vperm.xlu1 (!%p254_p3), %745, %v333_v0   ;;  %336 = vperm.xlu0 (!%p254_p3), %743, %v333_v0   ;;  %v424_v9 = vld [vmem:[%s945_s4] sm:$0x1] (!%p254_p3)  ;;  %v339_v11 = vlaneseq (!%p254_p3)  ;;  %vm527_vm1 = vcmask (!%p254_p3), 1040384   ;;  %s691_s7 = sshll.u32 (!%p254_p3), %s787_s22, 1 }
   0xc   : > { %s325_s8 = sadd.s32 (!%p254_p3), %s783_s21, %s691_s7 }
   0xd   : > { %v340_v12 = vshrl.u32 (!%p254_p3), %v339_v11, 7  ;;  %p326_p7 = scmp.lt.s32.totalorder (!%p254_p3), %s325_s8, 3 }
   0xf   : > { %746 = vset.pattern.permute.xlu1 (!%p254_p3), %v803_v3  ;;  %744 = vset.pattern.permute.xlu0 (!%p254_p3), %v804_v4  ;;  %v896_v13 = vsub.s32 (!%p254_p3), 0, %v340_v12  ;;  %v350_v14 = vsub.s32 (!%p254_p3), 1, %v340_v12  ;;  %v360_v16 = vsub.s32 (!%p254_p3), 2, %v340_v12  ;;  %v370_v20 = vsub.s32 (!%p254_p3), 3, %v340_v12 }
  0x10   : > { %365 = vperm.xlu1 %746, %v333_v0   ;;  %345 = vperm.xlu0 %744, %v333_v0   ;;  %s302_s10 = scalar_select %p301_p5, %s787_s22, 1 }
  0x11   : > { %s304_s11 = scalar_select %p303_p6, %s783_s21, 1 }
  0x12   : > { %s686_s12 = sshll.u32 %s302_s10, 1  ;;  %s959_s8 = smov (!%p326_p7, %s325_s8), 3 }
  0x13   : > { %s892_s13 = sadd.s32 %s686_s12, %s304_s11  ;;  %s328_s11 = scalar_lea.vmem %s947_s6, %s959_s8 }
  0x14   : > { %747 = vset.pattern.permute.xlu1 %v805_v5  ;;  %748 = vset.pattern.permute.xlu0 %v806_v6  ;;  %s687_s14 = sshll.u32 %s892_s13, 2  ;;  %s323_s30 = scalar_lea.vmem %s946_s5, %s892_s13 }
  0x15   : > { %375 = vperm.xlu1 %747, %v333_v0   ;;  %385 = vperm.xlu0 %748, %v333_v0   ;;  %s308_s17 = scalar_lea.vmem %s941_s0, %s687_s14  ;;  %s316_s20 = scalar_lea.vmem %s942_s1, %s687_s14 }
  0x16   : > { %v331_v15 = vld [vmem:[%s308_s17] sm:$0xf] }
  0x17   : > { %v342_v19 = vrot.slane %v331_v15, %v896_v13  ;;  %v351_v21 = vrot.slane %v331_v15, %v350_v14  ;;  %v361_v22 = vrot.slane %v331_v15, %v360_v16  ;;  %v332_v24 = vld [vmem:[%s316_s20] sm:$0xf]  ;;  %v371_v27 = vrot.slane %v331_v15, %v370_v20 }
  0x18   : > { %v381_v29 = vrot.slane %v332_v24, %v896_v13  ;;  %v391_v32 = vrot.slane %v332_v24, %v350_v14  ;;  %v401_v40 = vrot.slane %v332_v24, %v360_v16  ;;  %v411_v45 = vrot.slane %v332_v24, %v370_v20 }
  0x19   : > { %749 = vset.pattern.permute.xlu1 %v807_v8  ;;  %751 = vset.pattern.permute.xlu0 %v802_v2 }
  0x1a   : > { %395 = vperm.xlu1 %749, %v333_v0   ;;  %417 = vperm.xlu0 %751, %v414_v7  }
  0x1e   : > { %750 = vset.pattern.permute.xlu1 %v808_v10  ;;  %754 = vset.pattern.permute.xlu0 %v801_v1 }
  0x1f   : > { %405 = vperm.xlu1 %750, %v333_v0   ;;  %449 = vperm.xlu0 %754, %v424_v9  }
  0x23   : > { %752 = vset.pattern.permute.xlu1 %v804_v4  ;;  %757 = vset.pattern.permute.xlu0 %v806_v6 }
  0x24   : > { %436 = vperm.xlu1 %752, %v424_v9   ;;  %488 = vperm.xlu0 %757, %v424_v9  }
  0x28   : > { %753 = vset.pattern.permute.xlu1 %v802_v2  ;;  %760 = vset.pattern.permute.xlu0 %v808_v10 }
  0x29   : > { %427 = vperm.xlu1 %753, %v424_v9  }
  0x2d   : > { %755 = vset.pattern.permute.xlu1 %v803_v3 }
  0x2e   : > { %462 = vperm.xlu1 %755, %v424_v9  }
  0x32   : > { %756 = vset.pattern.permute.xlu1 %v805_v5 }
  0x33   : > { %475 = vperm.xlu1 %756, %v424_v9  }
  0x37   : > { %758 = vset.pattern.permute.xlu1 %v807_v8 }
  0x38   : > { %501 = vperm.xlu1 %758, %v424_v9  }
  0x3c   : > { %759 = vset.pattern.permute.xlu1 %v808_v10 }
  0x3d   : > { %514 = vperm.xlu1 %759, %v424_v9  }
  0x8a   : > { %v356_v17 = vpop.permute.xlu1 %355  ;;  %v337_v18 = vpop.permute.xlu0 %336 }
  0x8b   : > { %v343_v23 = vmul.f32 %v342_v19, %v337_v18  ;;  %v362_v30 = vmul.f32 %v361_v22, %v356_v17 }
  0x8f   : > { %v366_v25 = vpop.permute.xlu1 %365  ;;  %v346_v26 = vpop.permute.xlu0 %345 }
  0x90   : > { %v352_v28 = vmul.f32 %v351_v21, %v346_v26  ;;  %v372_v33 = vmul.f32 %v371_v27, %v366_v25 }
  0x92   : > { %v353_v31 = vadd.f32 %v352_v28, %v343_v23 }
  0x94   : > { %v363_v34 = vadd.f32 %v362_v30, %v353_v31  ;;  %v376_v35 = vpop.permute.xlu1 %375  ;;  %v386_v36 = vpop.permute.xlu0 %385  ;;  %v539_v31 = vand.u32 127, %v339_v11 }
  0x95   : > { %v382_v37 = vmul.f32 %v381_v29, %v376_v35  ;;  %v392_v39 = vmul.f32 %v391_v32, %v386_v36 }
  0x96   : > { %v373_v38 = vadd.f32 %v372_v33, %v363_v34  ;;  %vm540_vm2 = vcmp.eq.s32.totalorder %v539_v31, 0  ;;  %vm542_vm3 = vcmp.eq.s32.totalorder %v539_v31, 1  ;;  %vm545_vm4 = vcmp.eq.s32.totalorder %v539_v31, 2 }
  0x98   : > { %v383_v41 = vadd.f32 %v382_v37, %v373_v38 }
  0x99   : > { %v396_v42 = vpop.permute.xlu1 %395  ;;  %v418_v50 = vpop.permute.xlu0 %417 }
  0x9a   : > { %v393_v43 = vadd.f32 %v392_v39, %v383_v41  ;;  %v402_v44 = vmul.f32 %v401_v40, %v396_v42 }
  0x9c   : > { %v403_v47 = vadd.f32 %v402_v44, %v393_v43 }
  0x9e   : > { %v406_v46 = vpop.permute.xlu1 %405  ;;  %v450_v59 = vpop.permute.xlu0 %449 }
  0x9f   : > { %v412_v48 = vmul.f32 %v411_v45, %v406_v46  ;;  %v455_v60 = vrot.slane %v450_v59, %v896_v13 }
  0xa1   : > { %v413_v49 = vadd.f32 %v412_v48, %v403_v47 }
  0xa3   : > { %v420_v51 = vadd.f32 %v418_v50, %v413_v49  ;;  %v437_v52 = vpop.permute.xlu1 %436  ;;  %v489_v2 = vpop.permute.xlu0 %488 }
  0xa4   : > { %v442_v55 = vrot.slane %v437_v52, %v896_v13  ;;  %v494_v7 = vrot.slane %v489_v2, %v896_v13 }
  0xa5   : > { %vm421_vm0 = vcmp.ge.f32.partialorder %v420_v51, 0.0  ;;  %v422_v53 = vmul.f32 0.01, %v420_v51 }
  0xa7   : > { %v423_v54 = vsel %vm421_vm0, %v420_v51, %v422_v53 }
  0xa8   : > { %v428_v56 = vpop.permute.xlu1 %427  ;;  %v443_v57 = vmul.f32 %v442_v55, %v423_v54  ;;  %v456_v1 = vmul.f32 %v455_v60, %v423_v54  ;;  %v495_v14 = vmul.f32 %v494_v7, %v423_v54 }
  0xa9   : > { %v433_v58 = vrot.slane %v428_v56, %v896_v13 }
  0xaa   : > { %v445_v61 = vrot.slane %v443_v57, 1  ;;  %v458_v6 = vrot.slane %v456_v1, 2  ;;  %v497_v21 = vrot.slane %v495_v14, 5 }
  0xab   : > { %v434_v62 = vmul.f32 %v433_v58, %v423_v54 }
  0xad   : > { %v463_v63 = vpop.permute.xlu1 %462  ;;  %v447_v4 = vadd.f32 %v445_v61, %v434_v62 }
  0xae   : > { %v468_v0 = vrot.slane %v463_v63, %v896_v13 }
  0xaf   : > { %v460_v10 = vadd.f32 %v458_v6, %v447_v4 }
  0xb0   : > { %v469_v3 = vmul.f32 %v468_v0, %v423_v54 }
  0xb2   : > { %v476_v5 = vpop.permute.xlu1 %475  ;;  %v471_v8 = vrot.slane %v469_v3, 3 }
  0xb3   : > { %v481_v9 = vrot.slane %v476_v5, %v896_v13 }
  0xb4   : > { %v473_v15 = vadd.f32 %v471_v8, %v460_v10 }
  0xb5   : > { %v482_v12 = vmul.f32 %v481_v9, %v423_v54 }
  0xb7   : > { %v484_v16 = vrot.slane %v482_v12, 4  ;;  %v502_v17 = vpop.permute.xlu1 %501 }
  0xb8   : > { %v507_v18 = vrot.slane %v502_v17, %v896_v13 }
  0xb9   : > { %v486_v19 = vadd.f32 %v484_v16, %v473_v15 }
  0xba   : > { %v508_v20 = vmul.f32 %v507_v18, %v423_v54 }
  0xbb   : > { %v499_v23 = vadd.f32 %v497_v21, %v486_v19 }
  0xbc   : > { %v515_v22 = vpop.permute.xlu1 %514  ;;  %v510_v24 = vrot.slane %v508_v20, 6 }
  0xbd   : > { %v520_v25 = vrot.slane %v515_v22, %v896_v13  ;;  %v809_v13 = vmov 0.0  }
  0xbe   : > { %v512_v27 = vadd.f32 %v510_v24, %v499_v23  ;;  %v541_v32 = vsel %vm540_vm2, 128.0, %v809_v13 }
  0xbf   : > { %v521_v26 = vmul.f32 %v520_v25, %v423_v54 }
  0xc1   : > { %v523_v28 = vrot.slane %v521_v26, 7 }
  0xc3   : > { %v525_v29 = vadd.f32 %v523_v28, %v512_v27 }
  0xc5   : > { %v528_v30 = vsel %vm527_vm1, %v525_v29, 0.0  ;;  %526 = vst [vmem:[%s323_s30] sm:$0x1] %v525_v29 }
  0xc6   : > { %529 = vadd.xlane.f32.xlu0 %v528_v30 }
 0x153   : > { %v530_v33 = vpop.xlane.xlu0 %529 }
 0x154   : > { %v532_v34 = vmul.f32 0.0078125, %v530_v33  ;;  %v543_v35 = vsel %vm542_vm3, %v530_v33, 0.0 }
 0x155   : > { %v544_v36 = vadd.f32 %v543_v35, %v541_v32 }
 0x156   : > { %v533_v37 = vsub.f32 %v525_v29, %v532_v34 }
 0x158   : > { %v534_v38 = vmul.f32 %v533_v37, %v533_v37 }
 0x15a   : > { %v535_v39 = vsel %vm527_vm1, %v534_v38, 0.0 }
 0x15b   : > { %536 = vadd.xlane.f32.xlu1 %v535_v39 }
 0x1e8   : > { %v537_v40 = vpop.xlane.xlu1 %536 }
 0x1e9   : > { %v546_v11 = vsel %vm545_vm4, %v537_v40, 0.0 }
 0x1ea   : > { %v547_v41 = vadd.f32 %v546_v11, %v544_v36 }
 0x1ec   : > { %548 = vst [vmem:[%s328_s11] sm:$0x1] %v547_v41 }
 0x1ed PF: > { %s17_s25 = sadd.s32 1, %s799_s25   ;;  %s948_s21 = smov %s791_s23 }
 0x1ee   : > { %p14_p8 = scmp.ge.s32.totalorder %s17_s25, 6   ;;  %s949_s22 = smov %s795_s24 }
 0x1ef   : > { %s950_s23 = smov %s953_s26  ;;  %s951_s24 = smov %s957_s27 }
 0x1f0   :  { %16 = sbr.rel (!%p14_p8) target bundleno = 3 (0x3), region = 85 }

</bundles_post_ra>
